<compile_context>
chip_gen: v6e
topology: v6e:2x2x1
jax: 0.10.0
libtpu: 0.0.40
codegen_flags: <defaults>
</compile_context>

<pallas_src>
import functools

import jax
import jax.numpy as jnp
from jax.experimental import pallas as pl
from jax.experimental.pallas import tpu as pltpu

_MIB = 1024 * 1024


def _round_up(v, m):
    return ((v + m - 1) // m) * m


def _tpu_defaults():
    """(generation tag, default tile_n, vmem_limit_bytes, bf16_elementwise)."""
    try:
        kind = jax.devices()[0].device_kind.lower()
    except Exception:
        kind = ""
    if "v7" in kind:
        return "v7", 4096, 48 * _MIB, True     # 64 MiB physical VMEM, 2 TCs
    if "v6" in kind:
        return "v6", 8192, 96 * _MIB, True     # 128 MiB VMEM, bf16 VPU
    if "v5" in kind:
        return "v5", 8192, 96 * _MIB, False    # 128 MiB VMEM, no bf16 VPU
    return None, 2048, None, False


def _tnet_kernel(n_points,
                 x_ref,
                 w1_ref, b1_ref,
                 w2_ref, b2_ref,
                 w3_ref,
                 out_ref,
                 max_acc):
    s_idx = pl.program_id(1)           # point-axis split (megacore feed)
    n_idx = pl.program_id(2)           # point tile within the split
    n_last = pl.num_programs(2) - 1
    tile_n = x_ref.shape[0]
    ew = b1_ref.dtype                  # bf16 on v6e/v7x, f32 on v5e/unknown

    # Init the per-(batch, split) running max on the first point tile.
    @pl.when(n_idx == 0)
    def _():
        max_acc[...] = jnp.full(max_acc.shape, -jnp.inf, dtype=max_acc.dtype)

    # ---- conv_1 (+ folded bn_1): MXU matmul (K zero-padded to 8) -----------
    h = jnp.dot(x_ref[...], w1_ref[...], preferred_element_type=jnp.float32)
    h = jnp.maximum(h.astype(ew) + b1_ref[...], 0).astype(jnp.bfloat16)

    # ---- conv_2 (+ folded bn_2) --------------------------------------------
    h = jnp.dot(h, w2_ref[...], preferred_element_type=jnp.float32)
    h = jnp.maximum(h.astype(ew) + b2_ref[...], 0).astype(jnp.bfloat16)

    # ---- conv_3: matmul only; folded bn_3 scale lives in w3, its bias and
    # the ReLU commute with the max-pool and are applied in the wrapper -------
    h3 = jnp.dot(h, w3_ref[...], preferred_element_type=jnp.float32)  # (tile_n, 256) f32

    # ---- running max over the point axis -----------------------------------
    # Only tiles that can reach past n_points need the -inf padded-row mask.
    g_tile = s_idx * pl.num_programs(2) + n_idx
    needs_mask = (g_tile + 1) * tile_n > n_points

    @pl.when(jnp.logical_not(needs_mask))
    def _():
        max_acc[...] = jnp.maximum(max_acc[...], h3.max(axis=0, keepdims=True))

    @pl.when(needs_mask)
    def _():
        row = g_tile * tile_n + jax.lax.broadcasted_iota(jnp.int32, (tile_n, 1), 0)
        hm = jnp.where(row < n_points, h3, -jnp.inf)
        max_acc[...] = jnp.maximum(max_acc[...], hm.max(axis=0, keepdims=True))

    # ---- emit the pooled feature for this (batch, split) on the last tile --
    @pl.when(n_idx == n_last)
    def _():
        out_ref[...] = max_acc[...]


def _fold_bn(w, b, gamma, beta, mean, var, eps=1e-5):
    """Fold eval-mode BatchNorm into the preceding matmul's weight/bias."""
    s = gamma / jnp.sqrt(var + eps)          # (C_out,)
    w_f = w * s[None, :]                     # (C_in, C_out)
    b_f = (b - mean) * s + beta              # (C_out,)
    return w_f, b_f


def make_params(input_dim, output_dim, key):
    """Deterministic synthetic parameters (matmul layout: (C_in, C_out))."""
    dims = [(input_dim, 64), (64, 128), (128, 256),                     # conv_1..3 (k=1)
            (256, 256), (256, 128), (128, output_dim * output_dim)]     # fc_1..3
    keys = jax.random.split(key, 2 * len(dims) + 1)
    params = []
    for i, (cin, cout) in enumerate(dims):
        w = 0.1 * jax.random.normal(keys[2 * i], (cin, cout), jnp.float32)
        b = 0.05 * jax.random.normal(keys[2 * i + 1], (cout,), jnp.float32)
        params.append((w, b))
    # BatchNorm params for the 5 BN layers (channels 64,128,256,256,128).
    bn = []
    for c in (64, 128, 256, 256, 128):
        gamma = 1.0 + 0.01 * jnp.arange(c, dtype=jnp.float32)
        beta = 0.02 * jnp.arange(c, dtype=jnp.float32)
        mean = 0.01 * jnp.arange(c, dtype=jnp.float32)
        var = 1.0 + 0.05 * jnp.arange(c, dtype=jnp.float32)
        bn.append((gamma, beta, mean, var))
    return params, bn


def _mm_bf16(a, w):
    return jnp.dot(a.astype(jnp.bfloat16), w.astype(jnp.bfloat16),
                   preferred_element_type=jnp.float32)


def transformation_net(x, params, bn, output_dim, *,
                       tile_n=None, n_splits=None, bf16_elementwise=None):
    """x: (B, num_points, input_dim) -- the layout the PyTorch module receives
    before its internal .transpose(2, 1)."""
    B, N, Cin = x.shape

    gen, tile_default, vmem_limit, bf16_ew_default = _tpu_defaults()
    if tile_n is None:
        tile_n = tile_default
    if bf16_elementwise is None:
        bf16_elementwise = bf16_ew_default
    if n_splits is None:
        # 2-way point-axis split only helps on v7x (2 TCs) when B is small.
        n_splits = 2 if (gen == "v7" and B < 4) else 1
    ew_dtype = jnp.bfloat16 if bf16_elementwise else jnp.float32

    # Fold eval-mode BN into the 5 BN-ed layers; fc_3 has no BN.
    folded = [_fold_bn(*params[i], *bn[i]) for i in range(5)] + [params[5]]
    (w1, b1), (w2, b2), (w3, b3), (wf1, bf1), (wf2, bf2), (wf3, bf3) = folded

    # ---- point-axis tiling: multiple of 8, balanced over n_splits ----------
    tile_n = max(8, (min(tile_n, _round_up(N, 8)) // 8) * 8)
    if n_splits > 1:
        per_split = max(8, _round_up(-(-N // n_splits), 8))
        tile_n = min(tile_n, per_split)
    tiles_total = _round_up(-(-N // tile_n), n_splits)
    tiles_per_split = tiles_total // n_splits
    n_pad = tiles_total * tile_n

    # ---- conv_1 on the MXU: pad K (= input_dim) up to 8 --------------------
    cin_pad = max(8, _round_up(Cin, 8))
    x_p = jnp.pad(x, ((0, 0), (0, n_pad - N), (0, cin_pad - Cin))).astype(jnp.bfloat16)
    w1_p = jnp.pad(w1, ((0, cin_pad - Cin), (0, 0))).astype(jnp.bfloat16)

    def row2(b, dt):
        return b.reshape(1, -1).astype(dt)

    args = [x_p,
            w1_p, row2(b1, ew_dtype),
            w2.astype(jnp.bfloat16), row2(b2, ew_dtype),
            w3.astype(jnp.bfloat16)]

    def const_spec(a):
        # Full-shape block, constant index_map: DMA'd once, resident in VMEM.
        return pl.BlockSpec(a.shape, lambda b, s, n: (0,) * a.ndim)

    in_specs = [pl.BlockSpec((None, tile_n, cin_pad),
                             lambda b, s, n: (b, s * tiles_per_split + n, 0))]
    in_specs += [const_spec(a) for a in args[1:]]

    # Each (batch, split) writes its pooled feature into a lane-dense 256-wide
    # column slab; splits are merged with a final max in the wrapper.
    out_specs = pl.BlockSpec((None, 1, 256), lambda b, s, n: (b, 0, s))

    out = pl.pallas_call(
        functools.partial(_tnet_kernel, N),
        out_shape=jax.ShapeDtypeStruct((B, 1, n_splits * 256), jnp.float32),
        grid_spec=pltpu.PrefetchScalarGridSpec(
            num_scalar_prefetch=0,
            grid=(B, n_splits, tiles_per_split),
            in_specs=in_specs,
            out_specs=out_specs,
            scratch_shapes=[pltpu.VMEM((1, 256), jnp.float32)]),
        compiler_params=pltpu.CompilerParams(
            dimension_semantics=("parallel", "parallel", "arbitrary"),
            vmem_limit_bytes=vmem_limit),
    )(*args)

    # ---- merge splits, deferred conv_3 bias+ReLU, fc tail (batched XLA) ----
    pooled = out.reshape(B, n_splits, 256).max(axis=1)          # (B, 256) f32
    g = jnp.maximum(pooled + b3, 0.0)                           # conv_3 bias + ReLU
    g = jnp.maximum(_mm_bf16(g, wf1) + bf1, 0.0)                # fc_1 (+bn_4)
    g = jnp.maximum(_mm_bf16(g, wf2) + bf2, 0.0)                # fc_2 (+bn_5)
    g = _mm_bf16(g, wf3) + bf3                                  # fc_3
    return g.reshape(B, output_dim, output_dim) + jnp.eye(output_dim, dtype=jnp.float32)


def transformation_net_ref(x, params, bn, output_dim, *, bf16_elementwise=False):
    """Pure-JAX reference mirroring the kernel's precision policy
    (bf16 matmul inputs, f32 accumulation); written in the natural PyTorch
    order (conv_3 bias/ReLU before the max-pool) to validate the deferral."""
    B, N, Cin = x.shape
    folded = [_fold_bn(*params[i], *bn[i]) for i in range(5)] + [params[5]]
    (w1, b1), (w2, b2), (w3, b3), (wf1, bf1), (wf2, bf2), (wf3, bf3) = folded
    ew = jnp.bfloat16 if bf16_elementwise else jnp.float32

    h = _mm_bf16(x.reshape(B * N, Cin), w1)
    h = jnp.maximum(h.astype(ew) + b1.astype(ew), 0).astype(jnp.float32)
    h = _mm_bf16(h, w2)
    h = jnp.maximum(h.astype(ew) + b2.astype(ew), 0).astype(jnp.float32)
    h = jnp.maximum(_mm_bf16(h, w3) + b3, 0.0)
    pooled = h.reshape(B, N, 256).max(axis=1)
    g = jnp.maximum(_mm_bf16(pooled, wf1) + bf1, 0.0)
    g = jnp.maximum(_mm_bf16(g, wf2) + bf2, 0.0)
    g = _mm_bf16(g, wf3) + bf3
    return g.reshape(B, output_dim, output_dim) + jnp.eye(output_dim, dtype=jnp.float32)


if __name__ == "__main__":
    B, N = 2, 20              # batch, num_points (N not a tile multiple)
    input_dim, output_dim = 3, 3

    key = jax.random.PRNGKey(0)
    kx, kp = jax.random.split(key)
    x = jax.random.normal(kx, (B, N, input_dim), jnp.float32)
    params, bn = make_params(input_dim, output_dim, kp)

    bf16_ew = _tpu_defaults()[3]
    ref = transformation_net_ref(x, params, bn, output_dim, bf16_elementwise=bf16_ew)

    # (a) hardware-derived default config.
    out_a = jax.block_until_ready(transformation_net(x, params, bn, output_dim))
    # (b) tile_n=8 + forced 2-way point split: exercises multi-tile
    #     accumulation, padded-row masking, and the split/merge path.
    out_b = jax.block_until_ready(
        transformation_net(x, params, bn, output_dim, tile_n=8, n_splits=2))

    for out in (out_a, out_b):
        assert out.shape == (B, output_dim, output_dim)
        assert jnp.allclose(out, ref, atol=2e-3, rtol=2e-3), "mismatch vs reference"

    print("KERNEL_OK")
</pallas_src>

<mosaic_0001>
module attributes {stable_mosaic.version = 11 : i64} {
  func.func @_tnet_kernel(%arg0: i32, %arg1: i32, %arg2: i32, %arg3: memref<1x24x8xbf16, #tpu.memory_space<vmem>>, %arg4: memref<8x64xbf16, #tpu.memory_space<vmem>>, %arg5: memref<1x64xf32, #tpu.memory_space<vmem>>, %arg6: memref<64x128xbf16, #tpu.memory_space<vmem>>, %arg7: memref<1x128xf32, #tpu.memory_space<vmem>>, %arg8: memref<128x256xbf16, #tpu.memory_space<vmem>>, %arg9: memref<1x1x256xf32, #tpu.memory_space<vmem>>, %arg10: memref<1x256xf32, #tpu.memory_space<vmem>>) attributes {dimension_semantics = [#tpu.dimension_semantics<parallel>, #tpu.dimension_semantics<parallel>, #tpu.dimension_semantics<arbitrary>], iteration_bounds = array<i64: 2, 1, 1>, scalar_prefetch = 0 : i64, scratch_operands = 1 : i64, tpu.core_type = #tpu.core_type<tc>, window_params = [{transform_indices = @transform_0, window_bounds = array<i64: 1, 24, 8>}, {pipeline_mode = #tpu.pipeline_mode<synchronous>, transform_indices = @transform_1, window_bounds = array<i64: 8, 64>}, {pipeline_mode = #tpu.pipeline_mode<synchronous>, transform_indices = @transform_2, window_bounds = array<i64: 1, 64>}, {pipeline_mode = #tpu.pipeline_mode<synchronous>, transform_indices = @transform_3, window_bounds = array<i64: 64, 128>}, {pipeline_mode = #tpu.pipeline_mode<synchronous>, transform_indices = @transform_4, window_bounds = array<i64: 1, 128>}, {pipeline_mode = #tpu.pipeline_mode<synchronous>, transform_indices = @transform_5, window_bounds = array<i64: 128, 256>}, {transform_indices = @transform_6, window_bounds = array<i64: 1, 1, 256>}]} {
    %c0_i32 = arith.constant 0 : i32
    %0 = arith.cmpi eq, %arg2, %c0_i32 : i32
    %1 = arith.extui %0 : i1 to i32
    %c0_i32_0 = arith.constant 0 : i32
    %2 = arith.cmpi ne, %1, %c0_i32_0 : i32
    scf.if %2 {
      %cst_22 = arith.constant 0xFF800000 : f32
      %36 = vector.broadcast %cst_22 : f32 to vector<1x256xf32>
      %c0_23 = arith.constant 0 : index
      %c0_24 = arith.constant 0 : index
      %37 = vector.load %arg10[%c0_23, %c0_24] : memref<1x256xf32, #tpu.memory_space<vmem>>, vector<1x256xf32>
      tpu.vector_store %arg10[%c0_23, %c0_24], %36 {strides = array<i32>} : memref<1x256xf32, #tpu.memory_space<vmem>>, vector<1x256xf32>,
    } else {
    }
    %c0 = arith.constant 0 : index
    %c0_1 = arith.constant 0 : index
    %c0_2 = arith.constant 0 : index
    %3 = vector.load %arg3[%c0, %c0_1, %c0_2] : memref<1x24x8xbf16, #tpu.memory_space<vmem>>, vector<1x24x8xbf16>
    %4 = vector.shape_cast %3 : vector<1x24x8xbf16> to vector<24x8xbf16>
    %c0_3 = arith.constant 0 : index
    %c0_4 = arith.constant 0 : index
    %5 = vector.load %arg4[%c0_3, %c0_4] : memref<8x64xbf16, #tpu.memory_space<vmem>>, vector<8x64xbf16>
    %cst = arith.constant dense<0.000000e+00> : vector<24x64xf32>
    %6 = tpu.matmul %4, %5, %cst {dimension_numbers = #tpu.dot_dimension_numbers<[1], [0], [0], [1], [0, 0, 1, 1], [], []>} : vector<24x8xbf16>, vector<8x64xbf16>, vector<24x64xf32> -> vector<24x64xf32>
    %c0_5 = arith.constant 0 : index
    %c0_6 = arith.constant 0 : index
    %7 = vector.load %arg5[%c0_5, %c0_6] : memref<1x64xf32, #tpu.memory_space<vmem>>, vector<1x64xf32>
    %8 = vector.broadcast %7 : vector<1x64xf32> to vector<24x64xf32>
    %9 = arith.addf %6, %8 : vector<24x64xf32>
    %cst_7 = arith.constant 0.000000e+00 : f32
    %10 = vector.broadcast %cst_7 : f32 to vector<24x64xf32>
    %11 = arith.maximumf %9, %10 : vector<24x64xf32>
    %12 = arith.truncf %11 : vector<24x64xf32> to vector<24x64xbf16>
    %c0_8 = arith.constant 0 : index
    %c0_9 = arith.constant 0 : index
    %13 = vector.load %arg6[%c0_8, %c0_9] : memref<64x128xbf16, #tpu.memory_space<vmem>>, vector<64x128xbf16>
    %cst_10 = arith.constant dense<0.000000e+00> : vector<24x128xf32>
    %14 = tpu.matmul %12, %13, %cst_10 {dimension_numbers = #tpu.dot_dimension_numbers<[1], [0], [0], [1], [0, 0, 1, 1], [], []>} : vector<24x64xbf16>, vector<64x128xbf16>, vector<24x128xf32> -> vector<24x128xf32>
    %c0_11 = arith.constant 0 : index
    %c0_12 = arith.constant 0 : index
    %15 = vector.load %arg7[%c0_11, %c0_12] : memref<1x128xf32, #tpu.memory_space<vmem>>, vector<1x128xf32>
    %16 = vector.broadcast %15 : vector<1x128xf32> to vector<24x128xf32>
    %17 = arith.addf %14, %16 : vector<24x128xf32>
    %cst_13 = arith.constant 0.000000e+00 : f32
    %18 = vector.broadcast %cst_13 : f32 to vector<24x128xf32>
    %19 = arith.maximumf %17, %18 : vector<24x128xf32>
    %20 = arith.truncf %19 : vector<24x128xf32> to vector<24x128xbf16>
    %c0_14 = arith.constant 0 : index
    %c0_15 = arith.constant 0 : index
    %21 = vector.load %arg8[%c0_14, %c0_15] : memref<128x256xbf16, #tpu.memory_space<vmem>>, vector<128x256xbf16>
    %cst_16 = arith.constant dense<0.000000e+00> : vector<24x256xf32>
    %22 = tpu.matmul %20, %21, %cst_16 {dimension_numbers = #tpu.dot_dimension_numbers<[1], [0], [0], [1], [0, 0, 1, 1], [], []>} : vector<24x128xbf16>, vector<128x256xbf16>, vector<24x256xf32> -> vector<24x256xf32>
    %c1_i32 = arith.constant 1 : i32
    %23 = arith.muli %arg1, %c1_i32 : i32
    %24 = arith.addi %23, %arg2 : i32
    %c1_i32_17 = arith.constant 1 : i32
    %25 = arith.addi %24, %c1_i32_17 : i32
    %c24_i32 = arith.constant 24 : i32
    %26 = arith.muli %25, %c24_i32 : i32
    %c20_i32 = arith.constant 20 : i32
    %27 = arith.cmpi sgt, %26, %c20_i32 : i32
    %true = arith.constant true
    %28 = arith.xori %27, %true : i1
    %29 = arith.extui %28 : i1 to i32
    %c0_i32_18 = arith.constant 0 : i32
    %30 = arith.cmpi ne, %29, %c0_i32_18 : i32
    scf.if %30 {
      %c0_22 = arith.constant 0 : index
      %c0_23 = arith.constant 0 : index
      %36 = vector.load %arg10[%c0_22, %c0_23] : memref<1x256xf32, #tpu.memory_space<vmem>>, vector<1x256xf32>
      %cst_24 = arith.constant dense<0xFF800000> : vector<256xf32>
      %37 = vector.multi_reduction <maximumf>, %22, %cst_24 [0] : vector<24x256xf32> to vector<256xf32>
      %38 = vector.shape_cast %37 : vector<256xf32> to vector<1x256xf32>
      %39 = arith.maximumf %36, %38 : vector<1x256xf32>
      %c0_25 = arith.constant 0 : index
      %c0_26 = arith.constant 0 : index
      %40 = vector.load %arg10[%c0_25, %c0_26] : memref<1x256xf32, #tpu.memory_space<vmem>>, vector<1x256xf32>
      tpu.vector_store %arg10[%c0_25, %c0_26], %39 {strides = array<i32>} : memref<1x256xf32, #tpu.memory_space<vmem>>, vector<1x256xf32>,
    } else {
    }
    %31 = arith.extui %27 : i1 to i32
    %c0_i32_19 = arith.constant 0 : i32
    %32 = arith.cmpi ne, %31, %c0_i32_19 : i32
    scf.if %32 {
      %c24_i32_22 = arith.constant 24 : i32
      %36 = arith.muli %24, %c24_i32_22 : i32
      %37 = tpu.iota {dimensions = array<i32: 0>} : vector<24x1xi32>
      %38 = vector.broadcast %36 : i32 to vector<24x1xi32>
      %39 = arith.addi %38, %37 : vector<24x1xi32>
      %c20_i32_23 = arith.constant 20 : i32
      %40 = vector.broadcast %c20_i32_23 : i32 to vector<24x1xi32>
      %41 = arith.cmpi slt, %39, %40 : vector<24x1xi32>
      %cst_24 = arith.constant 0xFF800000 : f32
      %42 = vector.shape_cast %41 : vector<24x1xi1> to vector<24x1xi1>
      %43 = vector.broadcast %42 : vector<24x1xi1> to vector<24x256xi1>
      %44 = vector.broadcast %cst_24 : f32 to vector<24x256xf32>
      %45 = arith.select %43, %22, %44 : vector<24x256xi1>, vector<24x256xf32>
      %c0_25 = arith.constant 0 : index
      %c0_26 = arith.constant 0 : index
      %46 = vector.load %arg10[%c0_25, %c0_26] : memref<1x256xf32, #tpu.memory_space<vmem>>, vector<1x256xf32>
      %cst_27 = arith.constant dense<0xFF800000> : vector<256xf32>
      %47 = vector.multi_reduction <maximumf>, %45, %cst_27 [0] : vector<24x256xf32> to vector<256xf32>
      %48 = vector.shape_cast %47 : vector<256xf32> to vector<1x256xf32>
      %49 = arith.maximumf %46, %48 : vector<1x256xf32>
      %c0_28 = arith.constant 0 : index
      %c0_29 = arith.constant 0 : index
      %50 = vector.load %arg10[%c0_28, %c0_29] : memref<1x256xf32, #tpu.memory_space<vmem>>, vector<1x256xf32>
      tpu.vector_store %arg10[%c0_28, %c0_29], %49 {strides = array<i32>} : memref<1x256xf32, #tpu.memory_space<vmem>>, vector<1x256xf32>,
    } else {
    }
    %c0_i32_20 = arith.constant 0 : i32
    %33 = arith.cmpi eq, %arg2, %c0_i32_20 : i32
    %34 = arith.extui %33 : i1 to i32
    %c0_i32_21 = arith.constant 0 : i32
    %35 = arith.cmpi ne, %34, %c0_i32_21 : i32
    scf.if %35 {
      %c0_22 = arith.constant 0 : index
      %c0_23 = arith.constant 0 : index
      %36 = vector.load %arg10[%c0_22, %c0_23] : memref<1x256xf32, #tpu.memory_space<vmem>>, vector<1x256xf32>
      %c0_24 = arith.constant 0 : index
      %c0_25 = arith.constant 0 : index
      %c0_26 = arith.constant 0 : index
      %37 = vector.load %arg9[%c0_24, %c0_25, %c0_26] : memref<1x1x256xf32, #tpu.memory_space<vmem>>, vector<1x1x256xf32>
      %38 = vector.shape_cast %37 : vector<1x1x256xf32> to vector<1x256xf32>
      %39 = vector.shape_cast %36 : vector<1x256xf32> to vector<1x1x256xf32>
      tpu.vector_store %arg9[%c0_24, %c0_25, %c0_26], %39 {strides = array<i32>} : memref<1x1x256xf32, #tpu.memory_space<vmem>>, vector<1x1x256xf32>,
    } else {
    }
    return
  }
  func.func @transform_0(%arg0: i32, %arg1: i32, %arg2: i32) -> (i32, i32, i32) {
    %c1_i32 = arith.constant 1 : i32
    %0 = arith.muli %arg1, %c1_i32 : i32
    %1 = arith.addi %0, %arg2 : i32
    %c0_i32 = arith.constant 0 : i32
    %c0_i32_0 = arith.constant 0 : i32
    return %arg0, %1, %c0_i32 : i32, i32, i32
  }
  func.func @transform_1(%arg0: i32, %arg1: i32, %arg2: i32) -> (i32, i32) {
    %c0_i32 = arith.constant 0 : i32
    %c0_i32_0 = arith.constant 0 : i32
    %c0_i32_1 = arith.constant 0 : i32
    return %c0_i32, %c0_i32_0 : i32, i32
  }
  func.func @transform_2(%arg0: i32, %arg1: i32, %arg2: i32) -> (i32, i32) {
    %c0_i32 = arith.constant 0 : i32
    %c0_i32_0 = arith.constant 0 : i32
    %c0_i32_1 = arith.constant 0 : i32
    return %c0_i32, %c0_i32_0 : i32, i32
  }
  func.func @transform_3(%arg0: i32, %arg1: i32, %arg2: i32) -> (i32, i32) {
    %c0_i32 = arith.constant 0 : i32
    %c0_i32_0 = arith.constant 0 : i32
    %c0_i32_1 = arith.constant 0 : i32
    return %c0_i32, %c0_i32_0 : i32, i32
  }
  func.func @transform_4(%arg0: i32, %arg1: i32, %arg2: i32) -> (i32, i32) {
    %c0_i32 = arith.constant 0 : i32
    %c0_i32_0 = arith.constant 0 : i32
    %c0_i32_1 = arith.constant 0 : i32
    return %c0_i32, %c0_i32_0 : i32, i32
  }
  func.func @transform_5(%arg0: i32, %arg1: i32, %arg2: i32) -> (i32, i32) {
    %c0_i32 = arith.constant 0 : i32
    %c0_i32_0 = arith.constant 0 : i32
    %c0_i32_1 = arith.constant 0 : i32
    return %c0_i32, %c0_i32_0 : i32, i32
  }
  func.func @transform_6(%arg0: i32, %arg1: i32, %arg2: i32) -> (i32, i32, i32) {
    %c0_i32 = arith.constant 0 : i32
    %c0_i32_0 = arith.constant 0 : i32
    return %arg0, %c0_i32, %arg1 : i32, i32, i32
  }
}

</mosaic_0001>

<bundles_post_ra>
// kernel: tpu_custom_call.1
= control target key start
LH: loop header
LB: loop body
LE: loop exit
PB: predicated region body
PF: predicated region fallthrough
CT: control target
= control target key end

     0   :  { %11 = vsyncpa [#allocation4], 0  ;;  %s1363_s0 = inlined_call_operand.vmem [shape: bf16[2,24,8], index: 0, kind: input, shape index: {}]   ;;  %s1364_s1 = inlined_call_operand.vmem [shape: bf16[8,64], index: 1, kind: input, shape index: {}]   ;;  %s1365_s2 = inlined_call_operand.vmem [shape: f32[1,64], index: 2, kind: input, shape index: {}]   ;;  %s1366_s3 = inlined_call_operand.vmem [shape: bf16[64,128], index: 3, kind: input, shape index: {}]   ;;  %s1367_s4 = inlined_call_operand.vmem [shape: f32[1,128], index: 4, kind: input, shape index: {}]   ;;  %s1368_s5 = inlined_call_operand.hbm [shape: bf16[128,256], index: 5, kind: input, shape index: {}]   ;;  %s1369_s6 = inlined_call_operand.hbm [shape: f32[2,1,256], index: 6, kind: output, shape index: {}]  }
   0x1   :  { %12 = vsyncpa [#allocation5], 0 }
   0x2   :  { %14 = vsyncpa [#allocation5 + $0x1], 0  ;;  %s1206_s21 = smov 0   ;;  %s1208_s22 = smov 0  }
   0x3   :  { %s1210_s23 = smov 0   ;;  %s1212_s24 = smov 0  }
   0x4   :  { %s1214_s25 = smov 0   ;;  %s1216_s26 = smov 0  }
   0x5 LB: > { %s883_s27 = sadd.s32 4294967295, %s1162_s26   ;;  %s884_s28 = sadd.s32 4294967294, %s1162_s26   ;;  %s1162_s26 = sphi %s1216_s26, %s20_s26   ;;  %s1158_s25 = sphi %s1214_s25, %s1380_s25   ;;  %s1154_s24 = sphi %s1212_s24, %s1379_s24   ;;  %s1150_s23 = sphi %s1210_s23, %s1378_s23   ;;  %s1146_s22 = sphi %s1208_s22, %s1377_s22   ;;  %s1142_s21 = sphi %s1206_s21, %s1376_s21  }
   0x6   : > { %s39_s29 = sadd.s32 1, %s1158_s25  ;;  %s183_s30 = sadd.s32 1, %s1150_s23 }
   0x7   : > { %p41_p0 = scmp.ge.s32.totalorder %s39_s29, 2  ;;  %p193_p1 = scmp.ne.s32.totalorder %s1150_s23, %s1146_s22 }
   0x8   : > { %p194_p2 = scmp.eq.s32.totalorder %s883_s27, 1  ;;  %p199_p3 = scmp.ne.s32.totalorder %s1146_s22, %s1142_s21 }
   0x9   : > { %s1382_s29 = smov (%p41_p0, %s39_s29), 0  ;;  %p200_p5 = scmp.eq.s32.totalorder %s884_s28, 1 }
   0xa   : > { %p1246_p4 = por %p194_p2, %p193_p1  ;;  %s178_s8 = ssub.s32 %s1158_s25, %s1382_s29 }
   0xb   : > { %p885_p6 = scmp.ge.s32.totalorder %s1162_s26, 1  ;;  %p181_p7 = scmp.eq.s32.totalorder %s178_s8, 0 }
   0xc   : > { %p1253_p8 = por %p200_p5, %p199_p3  ;;  %p207_p9 = scmp.lt.s32.totalorder %s1162_s26, 3 }
   0xd   : > { %s1259_s10 = scalar_select %p181_p7, %s1150_s23, %s183_s30  }
   0xe   : > { %p1261_p10 = pnand %p885_p6, %p207_p9  ;;  %p1265_p11 = scmp.eq.s32.totalorder %s883_s27, 0 }
   0xf   : > { %s1164_s13 = smov [#allocation3]  }
  0x10   : > { %p961_p12 = pneg %p1261_p10  ;;  %s231_s14 = sshll.u32 %s1164_s13, 4  ;;  %s232_s14 = int_to_ptr.vmem [resolvable:$true] %s231_s14 }
  0x11   : > { %s1067_s15 = scalar_lea.vmem %s232_s14, 2048  ;;  %p1075_p5 = scmp.lt.s32.totalorder %s232_s14, %s232_s14 }
  0x12   : > { %p962_p13 = pnand %p1265_p11, %p961_p12  ;;  %p1068_p1 = scmp.ne.s32.totalorder %s232_s14, %s1067_s15 }
  0x13   : > { %p1076_p6 = scmp.lt.s32.totalorder %s1067_s15, %s1067_s15 }
  0x14   : > { %p1058_p0 = pneg %p962_p13 }
  0x15   : > { %p1077_p7 = por %p1076_p6, %p1075_p5 }
  0x16   : > { %p1070_p2 = pnand %p1068_p1, %p1058_p0 }
  0x18   : > { %p1071_p3 = pneg %p1070_p2 }
  0x1a   : > { %p1078_p9 = pnand %p1077_p7, %p1071_p3 }
  0x1c   : > { %1081 = shalt.err (!%p1078_p9)
}
  0x1d   : > { %s1165_s16 = smov 128   ;;  %s1166_s17 = smov 8  }
  0x1e   : > { %964 = dma.hbm_to_vmem [thread:$0]  (!%p962_p13), %s1368_s5, 2048, %s232_s14, [#allocation4], %s1165_s16, %s1165_s16, %s1166_s17  }
  0x1f   : > { %262 = sbr.rel (%p1261_p10) target bundleno = 706 (0x2c2), region = 44 }
  0x24   : > { %1133 = dma.done.wait (%p1265_p11), [#allocation4], 2048  }
  0x25   : > { %1135 = vsyncadd (%p1265_p11), [#allocation4], 4294965248  ;;  %p299_p12 = scmp.lt.s32.totalorder %s1154_s24, 1  ;;  %vm346_vm0 = vcmask 1043456   ;;  %vm339_vm1 = vcmask 64512   ;;  %v1028_v4 = vld [vmem:[%s1366_s3 + $0x18] sm:$0xff]   ;;  %v315_v51 = vlaneseq }
  0x26   : > { %v323_v0 = vld [vmem:[%s1364_s1] sm:$0xf]  ;;  %v1029_v5 = vld [vmem:[%s1366_s3 + $0x10] sm:$0xff]   ;;  %v1030_v6 = vld [vmem:[%s1366_s3 + $0x8] sm:$0xff]   ;;  %vm442_vm2 = vcmask 523264   ;;  %v1167_v37 = vmov 0  }
  0x27   : > { %s300_s20 = scalar_select %p299_p12, %s1154_s24, 1  ;;  %953 = vmatprep.subr.msk.bf16.mxu1 %vm346_vm0, %v323_v0  ;;  %v348_v1 = vsel %vm346_vm0, %v323_v0, 0  ;;  %v1031_v7 = vld [vmem:[%s1366_s3] sm:$0xff]   ;;  %v1034_v9 = vld [vmem:[#allocation3 + $0x70] ss:$8 sps:$4 sm:$0xff]   ;;  %630 = vmatprep.mubr.bf16.mxu0 %v1167_v37  ;;  %vm1308_vm3 = vcmp.lt.s32.totalorder %v315_v51, 256 }
  0x28   : > { %936 = vmatpush3.bf16.msra.mxu1 %v348_v1  ;;  %v1032_v8 = vld [vmem:[#allocation3 + $0x74] ss:$8 sps:$4 sm:$0xff]   ;;  %v1035_v10 = vld [vmem:[#allocation3 + $0x64] ss:$8 sps:$4 sm:$0xff]   ;;  %v1037_v11 = vld [vmem:[#allocation3 + $0x60] ss:$8 sps:$4 sm:$0xff]  }
  0x29   : > { %s954_s27 = smul.u32 12, %s300_s20  ;;  %941 = vmatprep.subr.bf16.mxu1 %v1028_v4  ;;  %598 = vmatprep.subr.bf16.mxu0 %v1032_v8  ;;  %v1038_v12 = vld [vmem:[#allocation3 + $0x54] ss:$8 sps:$4 sm:$0xff]   ;;  %v1040_v13 = vld [vmem:[#allocation3 + $0x50] ss:$8 sps:$4 sm:$0xff]   ;;  %v1168_v53 = vmov -inf  }
  0x2a   : > { %599 = vmatpush1.bf16.msra.mxu0 %v1034_v9  ;;  %v1041_v14 = vld [vmem:[#allocation3 + $0x44] ss:$8 sps:$4 sm:$0xff]   ;;  %v1043_v15 = vld [vmem:[#allocation3 + $0x40] ss:$8 sps:$4 sm:$0xff]   ;;  %v1044_v16 = vld [vmem:[#allocation3 + $0x34] ss:$8 sps:$4 sm:$0xff]  }
  0x2b   : > { %s306_s8 = scalar_lea.vmem %s1363_s0, %s954_s27  ;;  %600 = vmatprep.subr.bf16.mxu0 %v1035_v10  ;;  %v1046_v17 = vld [vmem:[#allocation3 + $0x30] ss:$8 sps:$4 sm:$0xff]   ;;  %v892_v19 = vld [vmem:[%s1365_s2] ss:$0 sm:$0xff]  ;;  %v1047_v31 = vld [vmem:[#allocation3 + $0x24] ss:$8 sps:$4 sm:$0xff]  }
  0x2c   : > { %v1026_v2 = vld [vmem:[%s306_s8] sm:$0xff]   ;;  %v1027_v3 = vld [vmem:[%s306_s8 + $0x8] ss:$0 sps:$4 sm:$0xff]   ;;  %v1052_v34 = vld [vmem:[#allocation3 + $0x10] ss:$8 sps:$4 sm:$0xff]   ;;  %v703_v54 = vshrl.u32 %v315_v51, 7 }
  0x2d   : > { %937 = vmatprep.mubr.msk.bf16.mxu1 %vm339_vm1, %v1026_v2  ;;  %v1049_v32 = vld [vmem:[#allocation3 + $0x20] ss:$8 sps:$4 sm:$0xff]   ;;  %v1050_v33 = vld [vmem:[#allocation3 + $0x14] ss:$8 sps:$4 sm:$0xff]   ;;  %v1053_v35 = vld [vmem:[#allocation3 + $0x4] ss:$8 sps:$4 sm:$0xff]  }
  0x2e   : > { %938 = vmatmul.mubr.msk.bf16.vlgmr.msra.gmra.mxu1 %vm339_vm1, %v1027_v3  ;;  %601 = vmatpush1.bf16.msra.mxu0 %v1037_v11  ;;  %v1055_v36 = vld [vmem:[#allocation3] ss:$8 sps:$4 sm:$0xff]   ;;  %v897_v40 = vld [vmem:[%s1367_s4] ss:$0 sm:$0xff]  ;;  %319 = vst.msk [vmem:[#allocation2] sm:$0x3] %vm1308_vm3, %v1168_v53 }
  0x2f   : > { %942 = vmatpush3.bf16.msra.mxu1 %v1028_v4  ;;  %602 = vmatprep.subr.bf16.mxu0 %v1038_v12  ;;  %v705_v57 = vadd.s32 16, %v703_v54  ;;  %v1169_v10 = vmov 1966171168   ;;  %s294_s13 = sand.u32 1, %s1146_s22   ;;  %s925_s12 = sshll.u32 %s1154_s24, 5 }
  0x30   : > { %943 = vmatprep.subr.bf16.mxu1 %v1029_v5  ;;  %v746_v11 = vunpack.c.l.s4 %v1169_v10  ;;  %s890_s11 = sshll.u32 %s294_s13, 1  ;;  %s1321_s18 = scalar_lea.hbm %s1369_s6, %s925_s12 }
  0x31   : > { %vm712_vm4 = vcmp.lt.s32.totalorder %v705_v57, 20  ;;  %s296_s14 = scalar_lea.vmem [#allocation6], %s890_s11  ;;  %s776_s19 = scalar_lea.sflag [#allocation5], %s294_s13 }
  0x32   : > { %603 = vmatpush1.bf16.msra.mxu0 %v1040_v13  ;;  %s792_s15 = sshll.u32 %s296_s14, 4  ;;  %s1170_s27 = smov [#allocation6]   ;;  %s793_s15 = int_to_ptr.vmem [resolvable:$true] %s792_s15 }
  0x33   : > { %944 = vmatpush3.bf16.msra.mxu1 %v1029_v5  ;;  %604 = vmatprep.subr.bf16.mxu0 %v1041_v14  ;;  %s1082_s20 = scalar_lea.vmem %s793_s15, 32  ;;  %s1086_s24 = sshll.u32 %s1170_s27, 4  ;;  %s1087_s24 = int_to_ptr.vmem [resolvable:$false] %s1086_s24 }
  0x34   : > { %945 = vmatprep.subr.bf16.mxu1 %v1030_v6  ;;  %p1083_p10 = scmp.ne.s32.totalorder %s793_s15, %s1082_s20  ;;  %s1088_s28 = scalar_lea.vmem %s1087_s24, 64 }
  0x35   : > { %p1089_p0 = scmp.lt.s32.totalorder %s793_s15, %s1087_s24  ;;  %p1090_p1 = scmp.lt.s32.totalorder %s1088_s28, %s1082_s20 }
  0x36   : > { %605 = vmatpush1.bf16.msra.mxu0 %v1043_v15  ;;  %p1084_p11 = pnand %p1083_p10, %p1246_p4 }
  0x37   : > { %946 = vmatpush3.bf16.msra.mxu1 %v1030_v6  ;;  %606 = vmatprep.subr.bf16.mxu0 %v1044_v16  ;;  %v747_v16 = vunpack.c.0.s8 %v746_v11  ;;  %p1091_p2 = por %p1090_p1, %p1089_p0 }
  0x38   : > { %947 = vmatprep.subr.bf16.mxu1 %v1031_v7  ;;  %p1085_p13 = pneg %p1084_p11 }
  0x3a   : > { %607 = vmatpush1.bf16.msra.mxu0 %v1046_v17  ;;  %p1092_p3 = pnand %p1091_p2, %p1085_p13 }
  0x3b   : > { %948 = vmatpush3.bf16.msra.mxu1 %v1031_v7  ;;  %608 = vmatprep.subr.bf16.mxu0 %v1047_v31 }
  0x3e   : > { %609 = vmatpush1.bf16.msra.mxu0 %v1049_v32 }
  0x3f   : > { %610 = vmatprep.subr.bf16.mxu0 %v1050_v33 }
  0x42   : > { %611 = vmatpush1.bf16.msra.mxu0 %v1052_v34 }
  0x43   : > { %612 = vmatprep.subr.bf16.mxu0 %v1053_v35 }
  0x46   : > { %613 = vmatpush1.bf16.msra.mxu0 %v1055_v36 }
  0xee   : > { %v939_v18 = vpop.f32.mrf.mxu1 }
  0xef   : > { %v393_v21 = vadd.f32 %v939_v18, %v892_v19 }
  0xf0   : > { %v384_v20 = vpop.f32.mrf.mxu1 }
  0xf1   : > { %v385_v23 = vadd.f32 %v892_v19, %v384_v20  ;;  %v400_v26 = vmax.f32 %v393_v21, 0.0  ;;  %v750_v20 = vsub.s32 %v747_v16, %v703_v54 }
  0xf2   : > { %v940_v22 = vpop.f32.mrf.mxu1 }
  0xf3   : > { %v398_v27 = vmax.f32 %v385_v23, 0.0  ;;  %v402_v30 = vpack.c.bf16 %v400_v26, %v400_v26 }
  0xf4   : > { %v387_v24 = vpop.f32.mrf.mxu1 }
  0xf5   : > { %v388_v25 = vadd.f32 %v892_v19, %v387_v24  ;;  %v725_v24 = vld [vmem:[#allocation2] sm:$0x3] }
  0xf7   : > { %v399_v28 = vmax.f32 %v388_v25, 0.0 }
  0xf9   : > { %v401_v29 = vpack.c.bf16 %v399_v28, %v398_v27 }
  0xfb   : > { %949 = vmatprep.mubr.msk.bf16.mxu1 %vm442_vm2, %v401_v29 }
  0xfc   : > { %950 = vmatmul.mubr.msk.bf16.vlgmr.msra.gmra.mxu1 %vm442_vm2, %v402_v30 }
 0x1bc   : > { %v951_v38 = vpop.f32.mrf.mxu1 }
 0x1bd   : > { %v492_v47 = vadd.f32 %v951_v38, %v897_v40 }
 0x1be   : > { %v483_v39 = vpop.f32.mrf.mxu1 }
 0x1bf   : > { %v484_v42 = vadd.f32 %v897_v40, %v483_v39  ;;  %v499_v49 = vmax.f32 %v492_v47, 0.0 }
 0x1c0   : > { %v952_v41 = vpop.f32.mrf.mxu1 }
 0x1c1   : > { %v497_v45 = vmax.f32 %v484_v42, 0.0  ;;  %v501_v50 = vpack.c.bf16 %v499_v49, %v499_v49 }
 0x1c2   : > { %v486_v43 = vpop.f32.mrf.mxu1 }
 0x1c3   : > { %v487_v44 = vadd.f32 %v897_v40, %v486_v43 }
 0x1c5   : > { %v498_v46 = vmax.f32 %v487_v44, 0.0 }
 0x1c7   : > { %v500_v48 = vpack.c.bf16 %v498_v46, %v497_v45 }
 0x1c9   : > { %631 = vmatmul.mubr.bf16.vlgmr.msra.gmra.mxu0 %v500_v48 }
 0x1ca   : > { %640 = vmatprep.mubr.bf16.mxu0 %v1167_v37 }
 0x1d1   : > { %641 = vmatmul.mubr.bf16.gmra.mxu0 %v501_v50 }
 0x289   : > { %v632_v55 = vpop.f32.mrf.mxu0 }
 0x28b   : > { %v634_v56 = vpop.f32.mrf.mxu0 }
 0x28d   : > { %v636_v58 = vpop.f32.mrf.mxu0 }
 0x28f   : > { %v638_v59 = vpop.f32.mrf.mxu0 }
 0x291   : > { %v642_v60 = vpop.f32.mrf.mxu0 }
 0x292   : > { %v723_v61 = vsel %vm712_vm4, %v642_v60, -inf }
 0x293   : > { %v726_v62 = vmax.f32 %v632_v55, %v723_v61  ;;  %v644_v63 = vpop.f32.mrf.mxu0 }
 0x294   : > { %v724_v0 = vsel %vm712_vm4, %v644_v63, -inf }
 0x295   : > { %v727_v1 = vmax.f32 %v726_v62, %v636_v58  ;;  %v734_v2 = vmax.f32 %v634_v56, %v724_v0  ;;  %v646_v3 = vpop.f32.mrf.mxu0 }
 0x297   : > { %v728_v4 = vrot.slane %v727_v1, 4  ;;  %v735_v5 = vmax.f32 %v734_v2, %v638_v59  ;;  %v647_v6 = vpop.f32.mrf.mxu0 }
 0x299   : > { %v729_v7 = vmax.f32 %v727_v1, %v728_v4  ;;  %v736_v8 = vrot.slane %v735_v5, 4 }
 0x29b   : > { %v730_v9 = vrot.slane %v729_v7, 2  ;;  %v737_v12 = vmax.f32 %v735_v5, %v736_v8 }
 0x29d   : > { %v731_v13 = vmax.f32 %v729_v7, %v730_v9  ;;  %v738_v14 = vrot.slane %v737_v12, 2 }
 0x29f   : > { %v732_v15 = vrot.slane %v731_v13, 1  ;;  %v739_v17 = vmax.f32 %v737_v12, %v738_v14 }
 0x2a1   : > { %v740_v18 = vrot.slane %v739_v17, 1  ;;  %v733_v19 = vmax.f32 %v731_v13, %v732_v15 }
 0x2a3   : > { %v741_v21 = vmax.f32 %v739_v17, %v740_v18 }
 0x2a5   : > { %v744_v22 = vcombine.low %v733_v19, %v741_v21 }
 0x2a7   : > { %v751_v23 = vrot.slane %v744_v22, %v750_v20 }
 0x2a9   : > { %v758_v25 = vrot.slane %v751_v23, %v750_v20 }
 0x2ab   : > { %v760_v26 = vmax.f32 %v725_v24, %v758_v25 }
 0x2ad   : > { %765 = vst.msk [vmem:[#allocation2] sm:$0x3] %vm1308_vm3, %v760_v26 }
 0x2b4   : > { %v769_v27 = vld [vmem:[#allocation2] sm:$0x3] }
 0x2b5   : > { %774 = vst.msk [vmem:[%s296_s14] sm:$0x3] %vm1308_vm3, %v769_v27 }
 0x2b6   : > { %1095 = shalt.err (!%p1092_p3)
}
 0x2b7   : > { %s1096_s30 = scalar_lea.hbm %s1321_s18, 32  ;;  %s1100_s11 = scalar_lea.hbm %s1369_s6, 64 }
 0x2b8   : > { %p1097_p5 = scmp.ne.s32.totalorder %s1321_s18, %s1096_s30  ;;  %p1101_p9 = scmp.lt.s32.totalorder %s1321_s18, %s1369_s6 }
 0x2b9   : > { %p1102_p12 = scmp.lt.s32.totalorder %s1100_s11, %s1096_s30 }
 0x2ba   : > { %p1098_p6 = pnand %p1097_p5, %p1246_p4 }
 0x2bb   : > { %p1103_p10 = por %p1102_p12, %p1101_p9 }
 0x2bc   : > { %p1099_p7 = pneg %p1098_p6 }
 0x2be   : > { %p1104_p11 = pnand %p1103_p10, %p1099_p7 }
 0x2c0   : > { %1107 = shalt.err (!%p1104_p11)
}
 0x2c1   : > { %959 = dma.vmem_to_hbm [thread:$0]  (%p1246_p4), %s793_s15, 32, %s1321_s18, %s776_s19  }
 0x2c2 PF: > { %p971_p13 = scmp.ge.s32.totalorder %s1162_s26, 2  ;;  %s804_s16 = sand.u32 1, %s1142_s21  }
 0x2c3   : > { %s805_s17 = scalar_lea.sflag [#allocation5], %s804_s16 }
 0x2c4   : > { %p966_p0 = pnand %p971_p13, %p1253_p8 }
 0x2c6   : > { %p967_p1 = pneg %p966_p0 }
 0x2c8   : > { %1137 = dma.done.wait (%p967_p1), %s805_s17, 32  }
 0x2c9   : > { %1139 = vsyncadd (%p967_p1), %s805_s17, 4294967264  ;;  %s20_s26 = sadd.s32 1, %s1162_s26   ;;  %s1376_s21 = smov %s1146_s22 }
 0x2ca   : > { %p17_p2 = scmp.ge.s32.totalorder %s20_s26, 4   ;;  %s1377_s22 = smov %s1150_s23 }
 0x2cb   : > { %s1378_s23 = smov %s1259_s10  ;;  %s1379_s24 = smov %s1158_s25 }
 0x2cc   : > { %s1380_s25 = smov %s1382_s29  ;;  %19 = sbr.rel (!%p17_p2) target bundleno = 5 (0x5), region = 100 }
 0x2d1   :  { %810 = vsyncpa [#allocation4], 1 }
 0x2d2   :  { %812 = vsyncpa [#allocation4 + $0x1], 1 }
 0x2d3   :  { %813 = vsyncpa [#allocation5], 1 }
 0x2d4   :  { %815 = vsyncpa [#allocation5 + $0x1], 1 }

</bundles_post_ra>
